<compile_context>
chip_gen: v6e
topology: v6e:2x2x1
jax: 0.10.0
libtpu: 0.0.40
codegen_flags: <defaults>
</compile_context>

<pallas_src>
import jax
import jax.numpy as jnp
from jax.experimental import pallas as pl
from jax.experimental.pallas import tpu as pltpu

INPUT_SIZE = 5
OUTPUT_SIZE = 2

LANES = 128            # lane tile (fast axis of a vreg)
SUBLANES = 8           # f32 sublane tile
TB_ROWS_MAX = 65536    # max batch rows per grid block (= 512 sublane tiles)


def _linear_kernel(wb_ref, xt_ref, ot_ref):
    """y.T = W @ x.T + b with the batch laid out on (sublane, lane).

    wb_ref: SMEM (K+1, N) f32 -- rows 0..K-1 = W.T, row K = bias.
    xt_ref: VMEM (K, TS, 128) -- x transposed; batch row r sits at
                                 (sublane s, lane l) with r = s*128 + l.
    ot_ref: VMEM (N, TS, 128) -- y transposed, same batch layout.
    """
    k = xt_ref.shape[0]
    n = ot_ref.shape[0]
    ts, tl = xt_ref.shape[1], xt_ref.shape[2]

    # Initialize each output channel's accumulator with its scalar bias.
    accs = [jnp.full((ts, tl), wb_ref[k, c], dtype=jnp.float32) for c in range(n)]

    # Unrolled K*N = 10 scalar*vector multiply-adds on fully-dense vregs.
    for j in range(k):
        xj = xt_ref[j].astype(jnp.float32)          # (TS, 128), all lanes useful
        for c in range(n):
            accs[c] = accs[c] + xj * wb_ref[j, c]

    for c in range(n):
        ot_ref[c] = accs[c].astype(ot_ref.dtype)


def pack_params(w, b):
    """Fold bias into the weight operand ONCE at init time (hoisted).

    w: (K, N) -- already W.T (input_size, output_size); b: (N,) or (1, N).
    Returns (K+1, N) f32: rows 0..K-1 = W.T, row K = bias.
    """
    w = jnp.asarray(w, jnp.float32).reshape(INPUT_SIZE, -1)
    b = jnp.asarray(b, jnp.float32).reshape(1, -1)
    return jnp.concatenate([w, b], axis=0)


@jax.jit
def linear_forward(x, wb):
    """y = x @ W.T + b, with wb = pack_params(W.T, b)."""
    batch, k = x.shape
    n = wb.shape[1]

    # Map batch rows onto (sublane tiles, 128 lanes).
    s_total = pl.cdiv(batch, LANES)
    ts_max = TB_ROWS_MAX // LANES
    if s_total <= ts_max:
        ts = s_total                 # single block: block dim == full dim is legal
        grid_blocks = 1
    else:
        # >= 2 blocks so both v7x TensorCores get work; TS a multiple of 8.
        ts = min(ts_max, pl.cdiv(pl.cdiv(s_total, 2), SUBLANES) * SUBLANES)
        grid_blocks = pl.cdiv(s_total, ts)   # ragged last block handled by Pallas
    rows_pad = s_total * LANES

    # One fused XLA pass: transpose + lane-pad the tail + reshape to (K, S, 128).
    # (Ideally this transposition happens at data-load time; it is still far
    #  cheaper than the wasted-lane compute it replaces.)
    xt = jnp.swapaxes(x, 0, 1)
    if rows_pad != batch:
        xt = jnp.pad(xt, ((0, 0), (0, rows_pad - batch)))
    xt3 = xt.reshape(k, s_total, LANES)

    yt3 = pl.pallas_call(
        _linear_kernel,
        out_shape=jax.ShapeDtypeStruct((n, s_total, LANES), x.dtype),
        grid=(grid_blocks,),
        in_specs=[
            pl.BlockSpec(memory_space=pltpu.MemorySpace.SMEM),      # wb scalars
            pl.BlockSpec((k, ts, LANES), lambda i: (0, i, 0)),      # x.T tile
        ],
        out_specs=pl.BlockSpec((n, ts, LANES), lambda i: (0, i, 0)),
        compiler_params=pltpu.CompilerParams(
            dimension_semantics=("parallel",)),
    )(wb, xt3)

    # (N, rows_pad) -> (batch, N); drops the lane padding.
    return yt3.reshape(n, rows_pad)[:, :batch].swapaxes(0, 1)


def model_forward(x, wb):
    # Mirror the PyTorch module's print of input/output sizes.
    y = linear_forward(x, wb)
    print("\tIn Model: input size", tuple(x.shape), "output size", tuple(y.shape))
    return y


if __name__ == "__main__":
    key = jax.random.PRNGKey(0)
    k_x, k_w, k_b, k_big = jax.random.split(key, 4)

    batch = 30   # the tutorial's DataLoader batch_size

    # nn.Linear-style init: U(-1/sqrt(in), 1/sqrt(in)); weight stored as W.T.
    bound = 1.0 / float(INPUT_SIZE) ** 0.5
    w = jax.random.uniform(k_w, (INPUT_SIZE, OUTPUT_SIZE), jnp.float32, -bound, bound)
    b = jax.random.uniform(k_b, (OUTPUT_SIZE,), jnp.float32, -bound, bound)
    wb = pack_params(w, b)          # folded + packed ONCE, outside the forward path

    x = jax.random.normal(k_x, (batch, INPUT_SIZE), jnp.float32)

    y = model_forward(x, wb)
    y = jax.block_until_ready(y)

    # Sanity check against plain JAX reference.
    y_ref = x @ w + b
    assert y.shape == (batch, OUTPUT_SIZE)
    assert jnp.allclose(y, y_ref, atol=1e-5, rtol=1e-5), "mismatch vs reference"

    # Exercise the multi-block (grid > 1, ragged last block) path once.
    big = TB_ROWS_MAX + 12345
    x_big = jax.random.normal(k_big, (big, INPUT_SIZE), jnp.float32)
    y_big = jax.block_until_ready(linear_forward(x_big, wb))
    assert jnp.allclose(y_big, x_big @ w + b, atol=1e-5, rtol=1e-5), "mismatch (tiled)"

    print("KERNEL_OK")
</pallas_src>

<mosaic_0001>
module attributes {stable_mosaic.version = 11 : i64} {
  func.func @_linear_kernel(%arg0: i32, %arg1: memref<6x2xf32, #tpu.memory_space<smem>>, %arg2: memref<5x1x128xf32, #tpu.memory_space<vmem>>, %arg3: memref<2x1x128xf32, #tpu.memory_space<vmem>>) attributes {dimension_semantics = [#tpu.dimension_semantics<parallel>], iteration_bounds = array<i64: 1>, scalar_prefetch = 0 : i64, scratch_operands = 0 : i64, tpu.core_type = #tpu.core_type<tc>, window_params = [{transform_indices = @transform_0, window_bounds = array<i64: 6, 2>}, {transform_indices = @transform_1, window_bounds = array<i64: 5, 1, 128>}, {transform_indices = @transform_2, window_bounds = array<i64: 2, 1, 128>}]} {
    %c5 = arith.constant 5 : index
    %c0 = arith.constant 0 : index
    %0 = memref.load %arg1[%c5, %c0] : memref<6x2xf32, #tpu.memory_space<smem>>
    %1 = vector.broadcast %0 : f32 to vector<1x128xf32>
    %c5_0 = arith.constant 5 : index
    %c1 = arith.constant 1 : index
    %2 = memref.load %arg1[%c5_0, %c1] : memref<6x2xf32, #tpu.memory_space<smem>>
    %3 = vector.broadcast %2 : f32 to vector<1x128xf32>
    %c0_1 = arith.constant 0 : index
    %c0_2 = arith.constant 0 : index
    %c0_3 = arith.constant 0 : index
    %4 = vector.load %arg2[%c0_1, %c0_2, %c0_3] : memref<5x1x128xf32, #tpu.memory_space<vmem>>, vector<1x1x128xf32>
    %5 = vector.shape_cast %4 : vector<1x1x128xf32> to vector<1x128xf32>
    %c0_4 = arith.constant 0 : index
    %c0_5 = arith.constant 0 : index
    %6 = memref.load %arg1[%c0_4, %c0_5] : memref<6x2xf32, #tpu.memory_space<smem>>
    %7 = vector.broadcast %6 : f32 to vector<1x128xf32>
    %8 = arith.mulf %5, %7 : vector<1x128xf32>
    %9 = arith.addf %1, %8 : vector<1x128xf32>
    %c0_6 = arith.constant 0 : index
    %c1_7 = arith.constant 1 : index
    %10 = memref.load %arg1[%c0_6, %c1_7] : memref<6x2xf32, #tpu.memory_space<smem>>
    %11 = vector.broadcast %10 : f32 to vector<1x128xf32>
    %12 = arith.mulf %5, %11 : vector<1x128xf32>
    %13 = arith.addf %3, %12 : vector<1x128xf32>
    %c1_8 = arith.constant 1 : index
    %c0_9 = arith.constant 0 : index
    %c0_10 = arith.constant 0 : index
    %14 = vector.load %arg2[%c1_8, %c0_9, %c0_10] : memref<5x1x128xf32, #tpu.memory_space<vmem>>, vector<1x1x128xf32>
    %15 = vector.shape_cast %14 : vector<1x1x128xf32> to vector<1x128xf32>
    %c1_11 = arith.constant 1 : index
    %c0_12 = arith.constant 0 : index
    %16 = memref.load %arg1[%c1_11, %c0_12] : memref<6x2xf32, #tpu.memory_space<smem>>
    %17 = vector.broadcast %16 : f32 to vector<1x128xf32>
    %18 = arith.mulf %15, %17 : vector<1x128xf32>
    %19 = arith.addf %9, %18 : vector<1x128xf32>
    %c1_13 = arith.constant 1 : index
    %c1_14 = arith.constant 1 : index
    %20 = memref.load %arg1[%c1_13, %c1_14] : memref<6x2xf32, #tpu.memory_space<smem>>
    %21 = vector.broadcast %20 : f32 to vector<1x128xf32>
    %22 = arith.mulf %15, %21 : vector<1x128xf32>
    %23 = arith.addf %13, %22 : vector<1x128xf32>
    %c2 = arith.constant 2 : index
    %c0_15 = arith.constant 0 : index
    %c0_16 = arith.constant 0 : index
    %24 = vector.load %arg2[%c2, %c0_15, %c0_16] : memref<5x1x128xf32, #tpu.memory_space<vmem>>, vector<1x1x128xf32>
    %25 = vector.shape_cast %24 : vector<1x1x128xf32> to vector<1x128xf32>
    %c2_17 = arith.constant 2 : index
    %c0_18 = arith.constant 0 : index
    %26 = memref.load %arg1[%c2_17, %c0_18] : memref<6x2xf32, #tpu.memory_space<smem>>
    %27 = vector.broadcast %26 : f32 to vector<1x128xf32>
    %28 = arith.mulf %25, %27 : vector<1x128xf32>
    %29 = arith.addf %19, %28 : vector<1x128xf32>
    %c2_19 = arith.constant 2 : index
    %c1_20 = arith.constant 1 : index
    %30 = memref.load %arg1[%c2_19, %c1_20] : memref<6x2xf32, #tpu.memory_space<smem>>
    %31 = vector.broadcast %30 : f32 to vector<1x128xf32>
    %32 = arith.mulf %25, %31 : vector<1x128xf32>
    %33 = arith.addf %23, %32 : vector<1x128xf32>
    %c3 = arith.constant 3 : index
    %c0_21 = arith.constant 0 : index
    %c0_22 = arith.constant 0 : index
    %34 = vector.load %arg2[%c3, %c0_21, %c0_22] : memref<5x1x128xf32, #tpu.memory_space<vmem>>, vector<1x1x128xf32>
    %35 = vector.shape_cast %34 : vector<1x1x128xf32> to vector<1x128xf32>
    %c3_23 = arith.constant 3 : index
    %c0_24 = arith.constant 0 : index
    %36 = memref.load %arg1[%c3_23, %c0_24] : memref<6x2xf32, #tpu.memory_space<smem>>
    %37 = vector.broadcast %36 : f32 to vector<1x128xf32>
    %38 = arith.mulf %35, %37 : vector<1x128xf32>
    %39 = arith.addf %29, %38 : vector<1x128xf32>
    %c3_25 = arith.constant 3 : index
    %c1_26 = arith.constant 1 : index
    %40 = memref.load %arg1[%c3_25, %c1_26] : memref<6x2xf32, #tpu.memory_space<smem>>
    %41 = vector.broadcast %40 : f32 to vector<1x128xf32>
    %42 = arith.mulf %35, %41 : vector<1x128xf32>
    %43 = arith.addf %33, %42 : vector<1x128xf32>
    %c4 = arith.constant 4 : index
    %c0_27 = arith.constant 0 : index
    %c0_28 = arith.constant 0 : index
    %44 = vector.load %arg2[%c4, %c0_27, %c0_28] : memref<5x1x128xf32, #tpu.memory_space<vmem>>, vector<1x1x128xf32>
    %45 = vector.shape_cast %44 : vector<1x1x128xf32> to vector<1x128xf32>
    %c4_29 = arith.constant 4 : index
    %c0_30 = arith.constant 0 : index
    %46 = memref.load %arg1[%c4_29, %c0_30] : memref<6x2xf32, #tpu.memory_space<smem>>
    %47 = vector.broadcast %46 : f32 to vector<1x128xf32>
    %48 = arith.mulf %45, %47 : vector<1x128xf32>
    %49 = arith.addf %39, %48 : vector<1x128xf32>
    %c4_31 = arith.constant 4 : index
    %c1_32 = arith.constant 1 : index
    %50 = memref.load %arg1[%c4_31, %c1_32] : memref<6x2xf32, #tpu.memory_space<smem>>
    %51 = vector.broadcast %50 : f32 to vector<1x128xf32>
    %52 = arith.mulf %45, %51 : vector<1x128xf32>
    %53 = arith.addf %43, %52 : vector<1x128xf32>
    %c0_33 = arith.constant 0 : index
    %c0_34 = arith.constant 0 : index
    %c0_35 = arith.constant 0 : index
    %54 = vector.load %arg3[%c0_33, %c0_34, %c0_35] : memref<2x1x128xf32, #tpu.memory_space<vmem>>, vector<1x1x128xf32>
    %55 = vector.shape_cast %54 : vector<1x1x128xf32> to vector<1x128xf32>
    %56 = vector.shape_cast %49 : vector<1x128xf32> to vector<1x1x128xf32>
    tpu.vector_store %arg3[%c0_33, %c0_34, %c0_35], %56 {strides = array<i32>} : memref<2x1x128xf32, #tpu.memory_space<vmem>>, vector<1x1x128xf32>,
    %c1_36 = arith.constant 1 : index
    %c0_37 = arith.constant 0 : index
    %c0_38 = arith.constant 0 : index
    %57 = vector.load %arg3[%c1_36, %c0_37, %c0_38] : memref<2x1x128xf32, #tpu.memory_space<vmem>>, vector<1x1x128xf32>
    %58 = vector.shape_cast %57 : vector<1x1x128xf32> to vector<1x128xf32>
    %59 = vector.shape_cast %53 : vector<1x128xf32> to vector<1x1x128xf32>
    tpu.vector_store %arg3[%c1_36, %c0_37, %c0_38], %59 {strides = array<i32>} : memref<2x1x128xf32, #tpu.memory_space<vmem>>, vector<1x1x128xf32>,
    return
  }
  func.func @transform_0(%arg0: i32) -> (i32, i32) {
    %c0_i32 = arith.constant 0 : i32
    %c0_i32_0 = arith.constant 0 : i32
    %c0_i32_1 = arith.constant 0 : i32
    return %c0_i32, %c0_i32_0 : i32, i32
  }
  func.func @transform_1(%arg0: i32) -> (i32, i32, i32) {
    %c0_i32 = arith.constant 0 : i32
    %c0_i32_0 = arith.constant 0 : i32
    %c0_i32_1 = arith.constant 0 : i32
    return %c0_i32, %arg0, %c0_i32_0 : i32, i32, i32
  }
  func.func @transform_2(%arg0: i32) -> (i32, i32, i32) {
    %c0_i32 = arith.constant 0 : i32
    %c0_i32_0 = arith.constant 0 : i32
    %c0_i32_1 = arith.constant 0 : i32
    return %c0_i32, %arg0, %c0_i32_0 : i32, i32, i32
  }
}

</mosaic_0001>

<bundles_post_ra>
// kernel: linear_forward.1
= control target key start
LH: loop header
LB: loop body
LE: loop exit
PB: predicated region body
PF: predicated region fallthrough
CT: control target
= control target key end

     0   :  { %7 = vsyncpa [#allocation3], 0  ;;  %s156_s0 = inlined_call_operand.vmem [shape: f32[6,2], index: 0, kind: input, shape index: {}]   ;;  %s157_s1 = inlined_call_operand.vmem [shape: f32[5,1,128], index: 1, kind: input, shape index: {}]   ;;  %s158_s2 = inlined_call_operand.vmem [shape: f32[2,1,128], index: 2, kind: output, shape index: {}]  }
   0x1   :  { %s14_s11 = sshll.u32 %s156_s0, 4  ;;  %s15_s11 = int_to_ptr.vmem [resolvable:$true] %s14_s11 }
   0x2   :  { %s102_s12 = scalar_lea.vmem %s15_s11, 128  ;;  %p107_p1 = scmp.lt.s32.totalorder %s15_s11, %s15_s11 }
   0x3   :  { %p103_p0 = scmp.ne.s32.totalorder %s15_s11, %s102_s12  ;;  %p108_p2 = scmp.lt.s32.totalorder %s102_s12, %s102_s12 }
   0x5   :  { %p109_p3 = por %p108_p2, %p107_p1 }
   0x7   :  { %p110_p4 = pnand %p109_p3, %p103_p0 }
   0x9   :  { %113 = shalt.err (!%p110_p4)
}
   0xa   :  { %s116_s13 = smov [#allocation2]  }
   0xb   :  { %17 = dma.vmem_to_smem %s15_s11, 128, %s116_s13, [#allocation3]  }
   0xc   :  { %114 = dma.done.wait [#allocation3], 128  }
   0xd   :  { %115 = vsyncadd [#allocation3], 4294967168 }
   0xe   :  { %23 = sfence }
   0xf   :  { %s85_s14 = sld [smem:[#allocation2 + $0x280]]  ;;  %v28_v0 = vld [vmem:[%s157_s1] sm:$0x1]  ;;  %v88_v1 = vld [vmem:[%s157_s1 + $0x1] sm:$0x1] }
  0x10   :  { %s29_s15 = sld [smem:[#allocation2]]  ;;  %v91_v4 = vld [vmem:[%s157_s1 + $0x2] sm:$0x1]  ;;  %v94_v9 = vld [vmem:[%s157_s1 + $0x3] sm:$0x1] }
  0x11   :  { %s89_s16 = sld [smem:[#allocation2 + $0x80]]  ;;  %v97_v13 = vld [vmem:[%s157_s1 + $0x4] sm:$0x1] }
  0x12   :  { %s92_s17 = sld [smem:[#allocation2 + $0x100]] }
  0x13   :  { %s95_s18 = sld [smem:[#allocation2 + $0x180]] }
  0x14   :  { %s98_s20 = sld [smem:[#allocation2 + $0x200]] }
  0x15   :  { %s86_s23 = sld [smem:[#allocation2 + $0x281]]  ;;  %v25_v2 = vstv %s85_s14 }
  0x16   :  { %v30_v3 = vstv %s29_s15  ;;  %s87_s26 = sld [smem:[#allocation2 + $0x1]] }
  0x17   :  { %v31_v5 = vmul.f32 %v30_v3, %v28_v0  ;;  %v40_v6 = vstv %s89_s16  ;;  %s90_s27 = sld [smem:[#allocation2 + $0x81]] }
  0x18   :  { %v41_v7 = vmul.f32 %v88_v1, %v40_v6  ;;  %v50_v8 = vstv %s92_s17  ;;  %s93_s30 = sld [smem:[#allocation2 + $0x101]] }
  0x19   :  { %v32_v10 = vadd.f32 %v31_v5, %v25_v2  ;;  %v51_v11 = vmul.f32 %v91_v4, %v50_v8  ;;  %v60_v12 = vstv %s95_s18  ;;  %s96_s3 = sld [smem:[#allocation2 + $0x181]] }
  0x1a   :  { %v70_v14 = vstv %s98_s20  ;;  %s99_s6 = sld [smem:[#allocation2 + $0x201]]  ;;  %v61_v16 = vmul.f32 %v94_v9, %v60_v12 }
  0x1b   :  { %v42_v15 = vadd.f32 %v41_v7, %v32_v10  ;;  %v27_v17 = vstv %s86_s23  ;;  %v71_v20 = vmul.f32 %v97_v13, %v70_v14 }
  0x1c   :  { %v34_v18 = vstv %s87_s26 }
  0x1d   :  { %v52_v19 = vadd.f32 %v51_v11, %v42_v15  ;;  %v35_v21 = vmul.f32 %v34_v18, %v28_v0  ;;  %v44_v22 = vstv %s90_s27 }
  0x1e   :  { %v45_v23 = vmul.f32 %v88_v1, %v44_v22  ;;  %v54_v24 = vstv %s93_s30 }
  0x1f   :  { %v62_v25 = vadd.f32 %v61_v16, %v52_v19  ;;  %v36_v26 = vadd.f32 %v35_v21, %v27_v17  ;;  %v55_v27 = vmul.f32 %v91_v4, %v54_v24  ;;  %v64_v28 = vstv %s96_s3 }
  0x20   :  { %v74_v29 = vstv %s99_s6  ;;  %v65_v32 = vmul.f32 %v94_v9, %v64_v28 }
  0x21   :  { %v72_v30 = vadd.f32 %v71_v20, %v62_v25  ;;  %v46_v31 = vadd.f32 %v45_v23, %v36_v26  ;;  %v75_v34 = vmul.f32 %v97_v13, %v74_v29 }
  0x23   :  { %77 = vst [vmem:[%s158_s2] sm:$0x1] %v72_v30  ;;  %v56_v33 = vadd.f32 %v55_v27, %v46_v31 }
  0x25   :  { %v66_v35 = vadd.f32 %v65_v32, %v56_v33 }
  0x27   :  { %v76_v36 = vadd.f32 %v75_v34, %v66_v35 }
  0x29   :  { %100 = vst [vmem:[%s158_s2 + $0x1] sm:$0x1] %v76_v36 }
  0x2a   :  { %84 = vsyncpa [#allocation3], 1 }

</bundles_post_ra>
